<compile_context>
chip_gen: v5e
topology: v5e:2x2
jax: 0.10.0
libtpu: 0.0.40
codegen_flags: <defaults>
</compile_context>

<pallas_src>
import functools

import jax
import jax.numpy as jnp
from jax import lax
from jax.experimental import pallas as pl
from jax.experimental.pallas import tpu as pltpu


def _round_up(n, m):
    return ((n + m - 1) // m) * m


def rnn_fv_kernel(x_ref, w_ih_ref, b_ref, w_hh_t_ref, w_lin_ref, b_lin_ref,
                  out_ref, state_ref, *, rec_dtype, unroll):
    """RNN unroll + linear head for one batch tile.

    x_ref:      (T, TB, 1)  f32  time-major inputs for this batch tile
    w_ih_ref:   (1, Hp)     f32  input->hidden weight (row vector)
    b_ref:      (1, Hp)     f32  combined bias (b_ih + b_hh)
    w_hh_t_ref: (Hp, Hp)    f32  hidden->hidden weight, pre-transposed
    w_lin_ref:  (1, Hp)     f32  output linear weight (row vector)
    b_lin_ref:  (1, 1)      f32
    out_ref:    (TB, 1)     f32  linear(h_T)
    state_ref:  (TB, Hp)    f32  final hidden state h_T
    """
    T = x_ref.shape[0]

    # Loop-invariant loads, hoisted once.
    # TODO: hold W_hh^T in the MXU weight registers across the whole unrolled
    # recurrence (pltpu.matmul_push_rhs once, then matmul_acc_lhs/matmul_pop
    # per step) if the bundle dump shows Mosaic re-pushing the RHS per step.
    w_hh_t = w_hh_t_ref[...].astype(rec_dtype)          # (Hp, Hp)
    w_ih = w_ih_ref[...]                                 # (1, Hp)
    bias = b_ref[...]                                    # (1, Hp)

    def step(t, h):
        # On-the-fly input projection: independent of h, so it overlaps with
        # the in-flight MXU drain / EUP tanh of the neighbouring steps.
        ih_t = x_ref[t] * w_ih + bias                    # (TB,1)*(1,Hp)+(1,Hp)
        # Serial critical path: dot -> add -> tanh (f32 accumulate; operands
        # optionally bf16 on v6e/v7x whose MXUs are natively bf16).
        hh = jnp.dot(h.astype(rec_dtype), w_hh_t,
                     preferred_element_type=jnp.float32)
        return jnp.tanh(ih_t + hh)

    h0 = jnp.zeros(state_ref.shape, dtype=jnp.float32)
    h_final = lax.fori_loop(0, T, step, h0, unroll=unroll)

    state_ref[...] = h_final
    # N == 1 output head: VPU multiply + lane reduction instead of a 1-column
    # MXU matmul (worst MXU shape, masked (B,1) store either way).
    out_ref[...] = (jnp.sum(h_final * w_lin_ref[...], axis=-1, keepdims=True)
                    + b_lin_ref[...])


def _vmem_limit_bytes():
    """Generation-aware scoped-VMEM limit: ~85% of physical VMEM."""
    try:
        cap = int(pltpu.get_tpu_info().vmem_capacity_bytes)
        return int(cap * 0.85)
    except Exception:
        return None  # fall back to the compiler default


def rnn_function_value(inputs, params, state=None, *,
                       recurrent_dtype=jnp.float32, batch_tiles=1):
    """inputs: (B, T, 1) float32. Returns (output (B, 1), state (1, B, H)).

    `state` is accepted for parity with the PyTorch forward signature but is
    ignored (the module calls self.rnn_net(inputs) without h0).

    recurrent_dtype: operand dtype of the recurrent matmul (f32 exact;
        bf16 with f32 accumulate is faster on v6e/v7x, ~4e-3 relative error).
    batch_tiles: number of independent batch tiles on a "parallel" grid axis
        (use 2 on v7x with B >= 16 to occupy both TensorCores; 1 elsewhere).
    """
    del state
    B, T, _ = inputs.shape
    H = params["w_hh"].shape[0]
    batch_tiles = max(1, int(batch_tiles))

    # Pad batch to a sublane multiple (8) per tile and hidden to a lane
    # multiple (128) so vregs / the MXU tile are filled; zero padding is exact
    # (padded hidden columns stay 0 through the tanh recurrence, padded batch
    # rows are sliced off before return).
    Bp = _round_up(max(B, 8), 8 * batch_tiles)
    tile_b = Bp // batch_tiles
    Hp = _round_up(max(H, 128), 128)

    f32 = jnp.float32
    x = jnp.transpose(inputs.astype(f32), (1, 0, 2))     # (T, B, 1) time-major
    x = jnp.pad(x, ((0, 0), (0, Bp - B), (0, 0)))        # (T, Bp, 1)

    pad_h = ((0, 0), (0, Hp - H))
    w_ih = jnp.pad(params["w_ih"].reshape(1, H).astype(f32), pad_h)
    bias = jnp.pad((params["b_ih"] + params["b_hh"]).reshape(1, H).astype(f32),
                   pad_h)                                # combined bias
    w_hh_t = jnp.pad(params["w_hh"].astype(f32).T,
                     ((0, Hp - H), (0, Hp - H)))         # (Hp, Hp)
    w_lin = jnp.pad(params["w_lin"].reshape(1, H).astype(f32), pad_h)
    b_lin = params["b_lin"].reshape(1, 1).astype(f32)

    unroll = max(1, min(T, 8))
    kernel = functools.partial(rnn_fv_kernel,
                               rec_dtype=recurrent_dtype, unroll=unroll)

    grid_spec = pltpu.PrefetchScalarGridSpec(
        num_scalar_prefetch=0,
        grid=(batch_tiles,),
        in_specs=[
            pl.BlockSpec((T, tile_b, 1), lambda i: (0, i, 0)),   # x
            pl.BlockSpec((1, Hp), lambda i: (0, 0)),             # w_ih
            pl.BlockSpec((1, Hp), lambda i: (0, 0)),             # bias
            pl.BlockSpec((Hp, Hp), lambda i: (0, 0)),            # w_hh^T
            pl.BlockSpec((1, Hp), lambda i: (0, 0)),             # w_lin
            pl.BlockSpec((1, 1), lambda i: (0, 0)),              # b_lin
        ],
        out_specs=(
            pl.BlockSpec((tile_b, 1), lambda i: (i, 0)),         # out
            pl.BlockSpec((tile_b, Hp), lambda i: (i, 0)),        # state
        ),
    )

    out, state_out = pl.pallas_call(
        kernel,
        out_shape=(
            jax.ShapeDtypeStruct((Bp, 1), f32),
            jax.ShapeDtypeStruct((Bp, Hp), f32),
        ),
        grid_spec=grid_spec,
        compiler_params=pltpu.CompilerParams(
            dimension_semantics=("parallel",),
            vmem_limit_bytes=_vmem_limit_bytes(),
        ),
    )(x, w_ih, bias, w_hh_t, w_lin, b_lin)

    return out[:B], state_out[:B, :H].reshape(1, B, H)


def init_params(key, num_hiddens):
    """Deterministic init matching PyTorch shapes (uniform(-1/sqrt(H), 1/sqrt(H)))."""
    H = num_hiddens
    k = jax.random.split(key, 6)
    s = 1.0 / jnp.sqrt(H)
    u = lambda kk, shape: jax.random.uniform(kk, shape, jnp.float32, -s, s)
    return {
        "w_ih": u(k[0], (H, 1)),    # weight_ih_l0
        "b_ih": u(k[1], (H,)),      # bias_ih_l0
        "w_hh": u(k[2], (H, H)),    # weight_hh_l0
        "b_hh": u(k[3], (H,)),      # bias_hh_l0
        "w_lin": u(k[4], (1, H)),   # linear.weight
        "b_lin": u(k[5], (1,)),     # linear.bias
    }


def reference_forward(inputs, params):
    """Pure-JAX reference of the PyTorch module for verification."""
    B, T, _ = inputs.shape
    H = params["w_hh"].shape[0]
    x = inputs[..., 0]
    h = jnp.zeros((B, H), jnp.float32)
    for t in range(T):
        ih = x[:, t:t + 1] @ params["w_ih"].T + params["b_ih"]
        hh = h @ params["w_hh"].T + params["b_hh"]
        h = jnp.tanh(ih + hh)
    out = h @ params["w_lin"].T + params["b_lin"]
    return out, h.reshape(1, B, H)


if __name__ == "__main__":
    key = jax.random.PRNGKey(0)
    k_x, k_p, k_x2 = jax.random.split(key, 3)

    B, T, H = 2, 8, 32
    inputs = jax.random.normal(k_x, (B, T, 1), dtype=jnp.float32)
    params = init_params(k_p, H)
    h0 = jnp.zeros((1, B, H), jnp.float32)   # begin_state(); ignored like PyTorch

    # ---- Exact f32 path (default) ----
    out, state = jax.jit(rnn_function_value)(inputs, params, h0)
    jax.block_until_ready((out, state))
    ref_out, ref_state = reference_forward(inputs, params)
    assert out.shape == (B, 1) and state.shape == (1, B, H)
    assert jnp.allclose(out, ref_out, atol=1e-5, rtol=1e-5)
    assert jnp.allclose(state, ref_state, atol=1e-5, rtol=1e-5)

    # ---- bf16 recurrent-matmul path (v6e/v7x lever), loosened tolerance ----
    fwd_bf16 = jax.jit(functools.partial(rnn_function_value,
                                         recurrent_dtype=jnp.bfloat16))
    out_b, state_b = fwd_bf16(inputs, params, h0)
    jax.block_until_ready((out_b, state_b))
    assert jnp.allclose(out_b, ref_out, atol=5e-2, rtol=5e-2)
    assert jnp.allclose(state_b, ref_state, atol=5e-2, rtol=5e-2)

    # ---- Parallel batch-tile grid (v7x dual-TensorCore path), exact f32 ----
    B2 = 16
    inputs2 = jax.random.normal(k_x2, (B2, T, 1), dtype=jnp.float32)
    h02 = jnp.zeros((1, B2, H), jnp.float32)
    fwd_mt = jax.jit(functools.partial(rnn_function_value, batch_tiles=2))
    out2, state2 = fwd_mt(inputs2, params, h02)
    jax.block_until_ready((out2, state2))
    ref_out2, ref_state2 = reference_forward(inputs2, params)
    assert jnp.allclose(out2, ref_out2, atol=1e-5, rtol=1e-5)
    assert jnp.allclose(state2, ref_state2, atol=1e-5, rtol=1e-5)

    print("KERNEL_OK")
</pallas_src>

<mosaic_0001>
module attributes {stable_mosaic.version = 11 : i64} {
  func.func @rnn_fv_kernel(%arg0: i32, %arg1: memref<8x8x1xf32, #tpu.memory_space<vmem>>, %arg2: memref<1x128xf32, #tpu.memory_space<vmem>>, %arg3: memref<1x128xf32, #tpu.memory_space<vmem>>, %arg4: memref<128x128xf32, #tpu.memory_space<vmem>>, %arg5: memref<1x128xf32, #tpu.memory_space<vmem>>, %arg6: memref<1x1xf32, #tpu.memory_space<vmem>>, %arg7: memref<8x1xf32, #tpu.memory_space<vmem>>, %arg8: memref<8x128xf32, #tpu.memory_space<vmem>>) attributes {dimension_semantics = [#tpu.dimension_semantics<parallel>], iteration_bounds = array<i64: 1>, scalar_prefetch = 0 : i64, scratch_operands = 0 : i64, tpu.core_type = #tpu.core_type<tc>, window_params = [{transform_indices = @transform_0, window_bounds = array<i64: 8, 8, 1>}, {pipeline_mode = #tpu.pipeline_mode<synchronous>, transform_indices = @transform_1, window_bounds = array<i64: 1, 128>}, {pipeline_mode = #tpu.pipeline_mode<synchronous>, transform_indices = @transform_2, window_bounds = array<i64: 1, 128>}, {pipeline_mode = #tpu.pipeline_mode<synchronous>, transform_indices = @transform_3, window_bounds = array<i64: 128, 128>}, {pipeline_mode = #tpu.pipeline_mode<synchronous>, transform_indices = @transform_4, window_bounds = array<i64: 1, 128>}, {pipeline_mode = #tpu.pipeline_mode<synchronous>, transform_indices = @transform_5, window_bounds = array<i64: 1, 1>}, {transform_indices = @transform_6, window_bounds = array<i64: 8, 1>}, {transform_indices = @transform_7, window_bounds = array<i64: 8, 128>}]} {
    %c0 = arith.constant 0 : index
    %c0_0 = arith.constant 0 : index
    %0 = vector.load %arg4[%c0, %c0_0] : memref<128x128xf32, #tpu.memory_space<vmem>>, vector<128x128xf32>
    %c0_1 = arith.constant 0 : index
    %c0_2 = arith.constant 0 : index
    %1 = vector.load %arg2[%c0_1, %c0_2] : memref<1x128xf32, #tpu.memory_space<vmem>>, vector<1x128xf32>
    %c0_3 = arith.constant 0 : index
    %c0_4 = arith.constant 0 : index
    %2 = vector.load %arg3[%c0_3, %c0_4] : memref<1x128xf32, #tpu.memory_space<vmem>>, vector<1x128xf32>
    %cst = arith.constant 0.000000e+00 : f32
    %3 = vector.broadcast %cst : f32 to vector<8x128xf32>
    %c0_i32 = arith.constant 0 : i32
    %4 = arith.index_cast %c0_i32 : i32 to index
    %c0_5 = arith.constant 0 : index
    %c0_6 = arith.constant 0 : index
    %5 = vector.load %arg1[%4, %c0_5, %c0_6] : memref<8x8x1xf32, #tpu.memory_space<vmem>>, vector<1x8x1xf32>
    %6 = vector.shape_cast %5 : vector<1x8x1xf32> to vector<8x1xf32>
    %7 = vector.broadcast %6 : vector<8x1xf32> to vector<8x128xf32>
    %8 = vector.broadcast %1 : vector<1x128xf32> to vector<8x128xf32>
    %9 = arith.mulf %7, %8 : vector<8x128xf32>
    %10 = vector.broadcast %2 : vector<1x128xf32> to vector<8x128xf32>
    %11 = arith.addf %9, %10 : vector<8x128xf32>
    %cst_7 = arith.constant dense<0.000000e+00> : vector<8x128xf32>
    %12 = tpu.matmul %3, %0, %cst_7 {dimension_numbers = #tpu.dot_dimension_numbers<[1], [0], [0], [1], [0, 0, 1, 1], [], []>} : vector<8x128xf32>, vector<128x128xf32>, vector<8x128xf32> -> vector<8x128xf32>
    %13 = arith.addf %11, %12 : vector<8x128xf32>
    %14 = math.tanh %13 : vector<8x128xf32>
    %c1_i32 = arith.constant 1 : i32
    %15 = arith.index_cast %c1_i32 : i32 to index
    %c0_8 = arith.constant 0 : index
    %c0_9 = arith.constant 0 : index
    %16 = vector.load %arg1[%15, %c0_8, %c0_9] : memref<8x8x1xf32, #tpu.memory_space<vmem>>, vector<1x8x1xf32>
    %17 = vector.shape_cast %16 : vector<1x8x1xf32> to vector<8x1xf32>
    %18 = vector.broadcast %17 : vector<8x1xf32> to vector<8x128xf32>
    %19 = vector.broadcast %1 : vector<1x128xf32> to vector<8x128xf32>
    %20 = arith.mulf %18, %19 : vector<8x128xf32>
    %21 = vector.broadcast %2 : vector<1x128xf32> to vector<8x128xf32>
    %22 = arith.addf %20, %21 : vector<8x128xf32>
    %cst_10 = arith.constant dense<0.000000e+00> : vector<8x128xf32>
    %23 = tpu.matmul %14, %0, %cst_10 {dimension_numbers = #tpu.dot_dimension_numbers<[1], [0], [0], [1], [0, 0, 1, 1], [], []>} : vector<8x128xf32>, vector<128x128xf32>, vector<8x128xf32> -> vector<8x128xf32>
    %24 = arith.addf %22, %23 : vector<8x128xf32>
    %25 = math.tanh %24 : vector<8x128xf32>
    %c2_i32 = arith.constant 2 : i32
    %26 = arith.index_cast %c2_i32 : i32 to index
    %c0_11 = arith.constant 0 : index
    %c0_12 = arith.constant 0 : index
    %27 = vector.load %arg1[%26, %c0_11, %c0_12] : memref<8x8x1xf32, #tpu.memory_space<vmem>>, vector<1x8x1xf32>
    %28 = vector.shape_cast %27 : vector<1x8x1xf32> to vector<8x1xf32>
    %29 = vector.broadcast %28 : vector<8x1xf32> to vector<8x128xf32>
    %30 = vector.broadcast %1 : vector<1x128xf32> to vector<8x128xf32>
    %31 = arith.mulf %29, %30 : vector<8x128xf32>
    %32 = vector.broadcast %2 : vector<1x128xf32> to vector<8x128xf32>
    %33 = arith.addf %31, %32 : vector<8x128xf32>
    %cst_13 = arith.constant dense<0.000000e+00> : vector<8x128xf32>
    %34 = tpu.matmul %25, %0, %cst_13 {dimension_numbers = #tpu.dot_dimension_numbers<[1], [0], [0], [1], [0, 0, 1, 1], [], []>} : vector<8x128xf32>, vector<128x128xf32>, vector<8x128xf32> -> vector<8x128xf32>
    %35 = arith.addf %33, %34 : vector<8x128xf32>
    %36 = math.tanh %35 : vector<8x128xf32>
    %c3_i32 = arith.constant 3 : i32
    %37 = arith.index_cast %c3_i32 : i32 to index
    %c0_14 = arith.constant 0 : index
    %c0_15 = arith.constant 0 : index
    %38 = vector.load %arg1[%37, %c0_14, %c0_15] : memref<8x8x1xf32, #tpu.memory_space<vmem>>, vector<1x8x1xf32>
    %39 = vector.shape_cast %38 : vector<1x8x1xf32> to vector<8x1xf32>
    %40 = vector.broadcast %39 : vector<8x1xf32> to vector<8x128xf32>
    %41 = vector.broadcast %1 : vector<1x128xf32> to vector<8x128xf32>
    %42 = arith.mulf %40, %41 : vector<8x128xf32>
    %43 = vector.broadcast %2 : vector<1x128xf32> to vector<8x128xf32>
    %44 = arith.addf %42, %43 : vector<8x128xf32>
    %cst_16 = arith.constant dense<0.000000e+00> : vector<8x128xf32>
    %45 = tpu.matmul %36, %0, %cst_16 {dimension_numbers = #tpu.dot_dimension_numbers<[1], [0], [0], [1], [0, 0, 1, 1], [], []>} : vector<8x128xf32>, vector<128x128xf32>, vector<8x128xf32> -> vector<8x128xf32>
    %46 = arith.addf %44, %45 : vector<8x128xf32>
    %47 = math.tanh %46 : vector<8x128xf32>
    %c4_i32 = arith.constant 4 : i32
    %48 = arith.index_cast %c4_i32 : i32 to index
    %c0_17 = arith.constant 0 : index
    %c0_18 = arith.constant 0 : index
    %49 = vector.load %arg1[%48, %c0_17, %c0_18] : memref<8x8x1xf32, #tpu.memory_space<vmem>>, vector<1x8x1xf32>
    %50 = vector.shape_cast %49 : vector<1x8x1xf32> to vector<8x1xf32>
    %51 = vector.broadcast %50 : vector<8x1xf32> to vector<8x128xf32>
    %52 = vector.broadcast %1 : vector<1x128xf32> to vector<8x128xf32>
    %53 = arith.mulf %51, %52 : vector<8x128xf32>
    %54 = vector.broadcast %2 : vector<1x128xf32> to vector<8x128xf32>
    %55 = arith.addf %53, %54 : vector<8x128xf32>
    %cst_19 = arith.constant dense<0.000000e+00> : vector<8x128xf32>
    %56 = tpu.matmul %47, %0, %cst_19 {dimension_numbers = #tpu.dot_dimension_numbers<[1], [0], [0], [1], [0, 0, 1, 1], [], []>} : vector<8x128xf32>, vector<128x128xf32>, vector<8x128xf32> -> vector<8x128xf32>
    %57 = arith.addf %55, %56 : vector<8x128xf32>
    %58 = math.tanh %57 : vector<8x128xf32>
    %c5_i32 = arith.constant 5 : i32
    %59 = arith.index_cast %c5_i32 : i32 to index
    %c0_20 = arith.constant 0 : index
    %c0_21 = arith.constant 0 : index
    %60 = vector.load %arg1[%59, %c0_20, %c0_21] : memref<8x8x1xf32, #tpu.memory_space<vmem>>, vector<1x8x1xf32>
    %61 = vector.shape_cast %60 : vector<1x8x1xf32> to vector<8x1xf32>
    %62 = vector.broadcast %61 : vector<8x1xf32> to vector<8x128xf32>
    %63 = vector.broadcast %1 : vector<1x128xf32> to vector<8x128xf32>
    %64 = arith.mulf %62, %63 : vector<8x128xf32>
    %65 = vector.broadcast %2 : vector<1x128xf32> to vector<8x128xf32>
    %66 = arith.addf %64, %65 : vector<8x128xf32>
    %cst_22 = arith.constant dense<0.000000e+00> : vector<8x128xf32>
    %67 = tpu.matmul %58, %0, %cst_22 {dimension_numbers = #tpu.dot_dimension_numbers<[1], [0], [0], [1], [0, 0, 1, 1], [], []>} : vector<8x128xf32>, vector<128x128xf32>, vector<8x128xf32> -> vector<8x128xf32>
    %68 = arith.addf %66, %67 : vector<8x128xf32>
    %69 = math.tanh %68 : vector<8x128xf32>
    %c6_i32 = arith.constant 6 : i32
    %70 = arith.index_cast %c6_i32 : i32 to index
    %c0_23 = arith.constant 0 : index
    %c0_24 = arith.constant 0 : index
    %71 = vector.load %arg1[%70, %c0_23, %c0_24] : memref<8x8x1xf32, #tpu.memory_space<vmem>>, vector<1x8x1xf32>
    %72 = vector.shape_cast %71 : vector<1x8x1xf32> to vector<8x1xf32>
    %73 = vector.broadcast %72 : vector<8x1xf32> to vector<8x128xf32>
    %74 = vector.broadcast %1 : vector<1x128xf32> to vector<8x128xf32>
    %75 = arith.mulf %73, %74 : vector<8x128xf32>
    %76 = vector.broadcast %2 : vector<1x128xf32> to vector<8x128xf32>
    %77 = arith.addf %75, %76 : vector<8x128xf32>
    %cst_25 = arith.constant dense<0.000000e+00> : vector<8x128xf32>
    %78 = tpu.matmul %69, %0, %cst_25 {dimension_numbers = #tpu.dot_dimension_numbers<[1], [0], [0], [1], [0, 0, 1, 1], [], []>} : vector<8x128xf32>, vector<128x128xf32>, vector<8x128xf32> -> vector<8x128xf32>
    %79 = arith.addf %77, %78 : vector<8x128xf32>
    %80 = math.tanh %79 : vector<8x128xf32>
    %c7_i32 = arith.constant 7 : i32
    %81 = arith.index_cast %c7_i32 : i32 to index
    %c0_26 = arith.constant 0 : index
    %c0_27 = arith.constant 0 : index
    %82 = vector.load %arg1[%81, %c0_26, %c0_27] : memref<8x8x1xf32, #tpu.memory_space<vmem>>, vector<1x8x1xf32>
    %83 = vector.shape_cast %82 : vector<1x8x1xf32> to vector<8x1xf32>
    %84 = vector.broadcast %83 : vector<8x1xf32> to vector<8x128xf32>
    %85 = vector.broadcast %1 : vector<1x128xf32> to vector<8x128xf32>
    %86 = arith.mulf %84, %85 : vector<8x128xf32>
    %87 = vector.broadcast %2 : vector<1x128xf32> to vector<8x128xf32>
    %88 = arith.addf %86, %87 : vector<8x128xf32>
    %cst_28 = arith.constant dense<0.000000e+00> : vector<8x128xf32>
    %89 = tpu.matmul %80, %0, %cst_28 {dimension_numbers = #tpu.dot_dimension_numbers<[1], [0], [0], [1], [0, 0, 1, 1], [], []>} : vector<8x128xf32>, vector<128x128xf32>, vector<8x128xf32> -> vector<8x128xf32>
    %90 = arith.addf %88, %89 : vector<8x128xf32>
    %91 = math.tanh %90 : vector<8x128xf32>
    %c8_i32 = arith.constant 8 : i32
    %c0_29 = arith.constant 0 : index
    %c0_30 = arith.constant 0 : index
    %92 = vector.load %arg8[%c0_29, %c0_30] : memref<8x128xf32, #tpu.memory_space<vmem>>, vector<8x128xf32>
    tpu.vector_store %arg8[%c0_29, %c0_30], %91 {strides = array<i32>} : memref<8x128xf32, #tpu.memory_space<vmem>>, vector<8x128xf32>,
    %c0_31 = arith.constant 0 : index
    %c0_32 = arith.constant 0 : index
    %93 = vector.load %arg5[%c0_31, %c0_32] : memref<1x128xf32, #tpu.memory_space<vmem>>, vector<1x128xf32>
    %94 = vector.broadcast %93 : vector<1x128xf32> to vector<8x128xf32>
    %95 = arith.mulf %91, %94 : vector<8x128xf32>
    %cst_33 = arith.constant dense<0.000000e+00> : vector<8xf32>
    %96 = vector.multi_reduction <add>, %95, %cst_33 [1] : vector<8x128xf32> to vector<8xf32>
    %97 = vector.shape_cast %96 : vector<8xf32> to vector<8x1xf32>
    %c0_34 = arith.constant 0 : index
    %c0_35 = arith.constant 0 : index
    %98 = vector.load %arg6[%c0_34, %c0_35] : memref<1x1xf32, #tpu.memory_space<vmem>>, vector<1x1xf32>
    %99 = vector.broadcast %98 : vector<1x1xf32> to vector<8x1xf32>
    %100 = arith.addf %97, %99 : vector<8x1xf32>
    %c0_36 = arith.constant 0 : index
    %c0_37 = arith.constant 0 : index
    %101 = vector.load %arg7[%c0_36, %c0_37] : memref<8x1xf32, #tpu.memory_space<vmem>>, vector<8x1xf32>
    tpu.vector_store %arg7[%c0_36, %c0_37], %100 {strides = array<i32>} : memref<8x1xf32, #tpu.memory_space<vmem>>, vector<8x1xf32>,
    return
  }
  func.func @transform_0(%arg0: i32) -> (i32, i32, i32) {
    %c0_i32 = arith.constant 0 : i32
    %c0_i32_0 = arith.constant 0 : i32
    %c0_i32_1 = arith.constant 0 : i32
    return %c0_i32, %arg0, %c0_i32_0 : i32, i32, i32
  }
  func.func @transform_1(%arg0: i32) -> (i32, i32) {
    %c0_i32 = arith.constant 0 : i32
    %c0_i32_0 = arith.constant 0 : i32
    %c0_i32_1 = arith.constant 0 : i32
    return %c0_i32, %c0_i32_0 : i32, i32
  }
  func.func @transform_2(%arg0: i32) -> (i32, i32) {
    %c0_i32 = arith.constant 0 : i32
    %c0_i32_0 = arith.constant 0 : i32
    %c0_i32_1 = arith.constant 0 : i32
    return %c0_i32, %c0_i32_0 : i32, i32
  }
  func.func @transform_3(%arg0: i32) -> (i32, i32) {
    %c0_i32 = arith.constant 0 : i32
    %c0_i32_0 = arith.constant 0 : i32
    %c0_i32_1 = arith.constant 0 : i32
    return %c0_i32, %c0_i32_0 : i32, i32
  }
  func.func @transform_4(%arg0: i32) -> (i32, i32) {
    %c0_i32 = arith.constant 0 : i32
    %c0_i32_0 = arith.constant 0 : i32
    %c0_i32_1 = arith.constant 0 : i32
    return %c0_i32, %c0_i32_0 : i32, i32
  }
  func.func @transform_5(%arg0: i32) -> (i32, i32) {
    %c0_i32 = arith.constant 0 : i32
    %c0_i32_0 = arith.constant 0 : i32
    %c0_i32_1 = arith.constant 0 : i32
    return %c0_i32, %c0_i32_0 : i32, i32
  }
  func.func @transform_6(%arg0: i32) -> (i32, i32) {
    %c0_i32 = arith.constant 0 : i32
    %c0_i32_0 = arith.constant 0 : i32
    return %arg0, %c0_i32 : i32, i32
  }
  func.func @transform_7(%arg0: i32) -> (i32, i32) {
    %c0_i32 = arith.constant 0 : i32
    %c0_i32_0 = arith.constant 0 : i32
    return %arg0, %c0_i32 : i32, i32
  }
}

</mosaic_0001>

<bundles_post_ra>
// kernel: rnn_function_value.1
= control target key start
LH: loop header
LB: loop body
LE: loop exit
PB: predicated region body
PF: predicated region fallthrough
CT: control target
= control target key end

     0   :  { %v353_v2 = vmov 0   ;;  %v354_v20 = vmov 0.0   ;;  %vm311_vm0 = vcmask 7168   ;;  %s668_s3 = inlined_call_operand.vmem [shape: f32[128,128], index: 3, kind: input, shape index: {}]   ;;  %s669_s0 = inlined_call_operand.vmem [shape: f32[8,8,1], index: 0, kind: input, shape index: {}]   ;;  %s670_s1 = inlined_call_operand.vmem [shape: f32[1,128], index: 1, kind: input, shape index: {}]   ;;  %s671_s2 = inlined_call_operand.vmem [shape: f32[1,128], index: 2, kind: input, shape index: {}]   ;;  %s672_s4 = inlined_call_operand.vmem [shape: f32[1,128], index: 4, kind: input, shape index: {}]   ;;  %s673_s5 = inlined_call_operand.<no memory space> [shape: f32[1,1], index: 5, kind: input, shape index: {}]   ;;  %s674_s7 = inlined_call_operand.vmem [shape: f32[8,128], index: 7, kind: output, shape index: {1}]   ;;  %s675_s6 = inlined_call_operand.vmem [shape: f32[8,1], index: 6, kind: output, shape index: {0}]  }
   0x1   :  { %v398_v0 = vld [vmem:[%s668_s3 + $0x78] sm:$0xff]  ;;  %v403_v1 = vld [vmem:[%s668_s3 + $0x70] sm:$0xff]  ;;  %330 = vset.pattern.permute.xlu0 %v353_v2  ;;  %331 = vset.pattern.permute.xlu1 %v353_v2  ;;  %v412_v3 = vld [vmem:[%s668_s3 + $0x68] sm:$0xff] }
   0x2   :  { %59 = vmatpush.msra.mxu0 %v398_v0  ;;  %90 = vmatpush.msra.mxu1 %v398_v0  ;;  %v421_v4 = vld [vmem:[%s668_s3 + $0x60] sm:$0xff]  ;;  %v432_v6 = vld [vmem:[%s668_s3 + $0x58] sm:$0xff]  ;;  %v441_v7 = vld [vmem:[%s668_s3 + $0x50] sm:$0xff] }
   0x3   :  { %121 = vmatpush.msra.mxu2 %v398_v0  ;;  %152 = vmatpush.msra.mxu3 %v398_v0  ;;  %v45_v5 = vld [vmem:[%s669_s0] sm:$0xff]  ;;  %v450_v8 = vld [vmem:[%s668_s3 + $0x48] sm:$0xff]  ;;  %v470_v11 = vld [vmem:[%s668_s3 + $0x38] sm:$0xff] }
   0x4   :  { %60 = vmatpush.msra.mxu0 %v403_v1  ;;  %91 = vmatpush.msra.mxu1 %v403_v1  ;;  %v321_v9 = vld [vmem:[%s669_s0 + $0x8] sm:$0xff]  ;;  %v462_v10 = vld [vmem:[%s668_s3 + $0x40] sm:$0xff]  ;;  %v479_v12 = vld [vmem:[%s668_s3 + $0x30] sm:$0xff] }
   0x5   :  { %122 = vmatpush.msra.mxu2 %v403_v1  ;;  %153 = vmatpush.msra.mxu3 %v403_v1  ;;  %v488_v13 = vld [vmem:[%s668_s3 + $0x28] sm:$0xff]  ;;  %v326_v14 = vld [vmem:[%s669_s0 + $0x30] sm:$0xff]  ;;  %v500_v15 = vld [vmem:[%s668_s3 + $0x20] sm:$0xff] }
   0x6   :  { %61 = vmatpush.msra.mxu0 %v412_v3  ;;  %48 = vperm.xlu0 %330, %v45_v5   ;;  %v508_v16 = vld [vmem:[%s668_s3 + $0x18] sm:$0xff]  ;;  %v517_v17 = vld [vmem:[%s668_s3 + $0x10] sm:$0xff]  ;;  %v526_v18 = vld [vmem:[%s668_s3 + $0x8] sm:$0xff] }
   0x7   :  { %92 = vmatpush.msra.mxu1 %v412_v3  ;;  %123 = vmatpush.msra.mxu2 %v412_v3  ;;  %v535_v19 = vld [vmem:[%s668_s3] sm:$0xff]  ;;  %v322_v29 = vld [vmem:[%s669_s0 + $0x10] sm:$0xff]  ;;  %v323_v30 = vld [vmem:[%s669_s0 + $0x18] sm:$0xff] }
   0x8   :  { %62 = vmatpush.msra.mxu0 %v421_v4  ;;  %154 = vmatpush.msra.mxu3 %v412_v3  ;;  %v618_v21 = vld [vmem:[%s670_s1] ss:$0 sm:$0xff]  ;;  %v327_v31 = vld [vmem:[%s669_s0 + $0x38] sm:$0xff]  ;;  %v325_v45 = vld [vmem:[%s669_s0 + $0x28] sm:$0xff] }
   0x9   :  { %93 = vmatpush.msra.mxu1 %v421_v4  ;;  %124 = vmatpush.msra.mxu2 %v421_v4  ;;  %v624_v24 = vld [vmem:[%s671_s2] ss:$0 sm:$0xff] }
   0xa   :  { %63 = vmatpush.msra.mxu0 %v432_v6  ;;  %155 = vmatpush.msra.mxu3 %v421_v4  ;;  %v324_v44 = vld [vmem:[%s669_s0 + $0x20] sm:$0xff] }
   0xb   :  { %94 = vmatpush.msra.mxu1 %v432_v6  ;;  %125 = vmatpush.msra.mxu2 %v432_v6 }
   0xc   :  { %64 = vmatpush.msra.mxu0 %v441_v7  ;;  %156 = vmatpush.msra.mxu3 %v432_v6 }
   0xd   :  { %95 = vmatpush.msra.mxu1 %v441_v7  ;;  %126 = vmatpush.msra.mxu2 %v441_v7 }
   0xe   :  { %65 = vmatpush.msra.mxu0 %v450_v8  ;;  %85 = vperm.xlu0 %330, %v321_v9  }
   0xf   :  { %96 = vmatpush.msra.mxu1 %v450_v8  ;;  %127 = vmatpush.msra.mxu2 %v450_v8 }
  0x10   :  { %66 = vmatpush.msra.mxu0 %v462_v10  ;;  %157 = vmatpush.msra.mxu3 %v441_v7 }
  0x11   :  { %97 = vmatpush.msra.mxu1 %v462_v10  ;;  %128 = vmatpush.msra.mxu2 %v462_v10 }
  0x12   :  { %67 = vmatpush.msra.mxu0 %v470_v11  ;;  %158 = vmatpush.msra.mxu3 %v450_v8 }
  0x13   :  { %98 = vmatpush.msra.mxu1 %v470_v11  ;;  %129 = vmatpush.msra.mxu2 %v470_v11 }
  0x14   :  { %68 = vmatpush.msra.mxu0 %v479_v12  ;;  %159 = vmatpush.msra.mxu3 %v462_v10 }
  0x15   :  { %99 = vmatpush.msra.mxu1 %v479_v12  ;;  %130 = vmatpush.msra.mxu2 %v479_v12 }
  0x16   :  { %69 = vmatpush.msra.mxu0 %v488_v13  ;;  %240 = vperm.xlu0 %330, %v326_v14  }
  0x17   :  { %100 = vmatpush.msra.mxu1 %v488_v13  ;;  %131 = vmatpush.msra.mxu2 %v488_v13 }
  0x18   :  { %70 = vmatpush.msra.mxu0 %v500_v15  ;;  %160 = vmatpush.msra.mxu3 %v470_v11 }
  0x19   :  { %101 = vmatpush.msra.mxu1 %v500_v15  ;;  %132 = vmatpush.msra.mxu2 %v500_v15 }
  0x1a   :  { %71 = vmatpush.msra.mxu0 %v508_v16  ;;  %161 = vmatpush.msra.mxu3 %v479_v12 }
  0x1b   :  { %102 = vmatpush.msra.mxu1 %v508_v16  ;;  %133 = vmatpush.msra.mxu2 %v508_v16 }
  0x1c   :  { %72 = vmatpush.msra.mxu0 %v517_v17  ;;  %162 = vmatpush.msra.mxu3 %v488_v13 }
  0x1d   :  { %103 = vmatpush.msra.mxu1 %v517_v17  ;;  %134 = vmatpush.msra.mxu2 %v517_v17 }
  0x1e   :  { %73 = vmatpush.msra.mxu0 %v526_v18  ;;  %163 = vmatpush.msra.mxu3 %v500_v15 }
  0x1f   :  { %104 = vmatpush.msra.mxu1 %v526_v18  ;;  %135 = vmatpush.msra.mxu2 %v526_v18 }
  0x20   :  { %74 = vmatpush.msra.mxu0 %v535_v19  ;;  %164 = vmatpush.msra.mxu3 %v508_v16 }
  0x21   :  { %75 = vmatmul.f32.vlgmr.msra.gmra.mxu0 %v354_v20  ;;  %105 = vmatpush.msra.mxu1 %v535_v19 }
  0x22   :  { %136 = vmatpush.msra.mxu2 %v535_v19  ;;  %165 = vmatpush.msra.mxu3 %v517_v17 }
  0x23   :  { %183 = vmatpush.msrb.mxu0 %v398_v0  ;;  %332 = vset.pattern.permute.xlu2 %v353_v2 }
  0x24   :  { %166 = vmatpush.msra.mxu3 %v526_v18  ;;  %214 = vmatpush.msrb.mxu1 %v398_v0 }
  0x25   :  { %184 = vmatpush.msrb.mxu0 %v403_v1  ;;  %245 = vmatpush.msrb.mxu2 %v398_v0 }
  0x26   :  { %167 = vmatpush.msra.mxu3 %v535_v19  ;;  %215 = vmatpush.msrb.mxu1 %v403_v1 }
  0x27   :  { %185 = vmatpush.msrb.mxu0 %v412_v3  ;;  %246 = vmatpush.msrb.mxu2 %v403_v1 }
  0x28   :  { %216 = vmatpush.msrb.mxu1 %v412_v3  ;;  %276 = vmatpush.msrb.mxu3 %v398_v0 }
  0x29   :  { %186 = vmatpush.msrb.mxu0 %v421_v4  ;;  %247 = vmatpush.msrb.mxu2 %v412_v3 }
  0x2a   :  { %217 = vmatpush.msrb.mxu1 %v421_v4  ;;  %277 = vmatpush.msrb.mxu3 %v403_v1 }
  0x2b   :  { %187 = vmatpush.msrb.mxu0 %v432_v6  ;;  %248 = vmatpush.msrb.mxu2 %v421_v4 }
  0x2c   :  { %218 = vmatpush.msrb.mxu1 %v432_v6  ;;  %278 = vmatpush.msrb.mxu3 %v412_v3 }
  0x2d   :  { %188 = vmatpush.msrb.mxu0 %v441_v7  ;;  %249 = vmatpush.msrb.mxu2 %v432_v6 }
  0x2e   :  { %219 = vmatpush.msrb.mxu1 %v441_v7  ;;  %279 = vmatpush.msrb.mxu3 %v421_v4 }
  0x2f   :  { %189 = vmatpush.msrb.mxu0 %v450_v8  ;;  %250 = vmatpush.msrb.mxu2 %v441_v7 }
  0x30   :  { %220 = vmatpush.msrb.mxu1 %v450_v8  ;;  %280 = vmatpush.msrb.mxu3 %v432_v6  ;;  %v13_v6 = vstv %s673_s5 }
  0x31   :  { %190 = vmatpush.msrb.mxu0 %v462_v10  ;;  %251 = vmatpush.msrb.mxu2 %v450_v8  ;;  %14 = vst [vmem:[#allocation2] sm:$0x1] %v13_v6 }
  0x32   :  { %221 = vmatpush.msrb.mxu1 %v462_v10  ;;  %281 = vmatpush.msrb.mxu3 %v441_v7 }
  0x33   :  { %191 = vmatpush.msrb.mxu0 %v470_v11  ;;  %252 = vmatpush.msrb.mxu2 %v462_v10 }
  0x34   :  { %222 = vmatpush.msrb.mxu1 %v470_v11  ;;  %282 = vmatpush.msrb.mxu3 %v450_v8 }
  0x35   :  { %192 = vmatpush.msrb.mxu0 %v479_v12  ;;  %253 = vmatpush.msrb.mxu2 %v470_v11 }
  0x36   :  { %223 = vmatpush.msrb.mxu1 %v479_v12  ;;  %283 = vmatpush.msrb.mxu3 %v462_v10 }
  0x37   :  { %193 = vmatpush.msrb.mxu0 %v488_v13  ;;  %254 = vmatpush.msrb.mxu2 %v479_v12 }
  0x38   :  { %224 = vmatpush.msrb.mxu1 %v488_v13  ;;  %284 = vmatpush.msrb.mxu3 %v470_v11 }
  0x39   :  { %194 = vmatpush.msrb.mxu0 %v500_v15  ;;  %255 = vmatpush.msrb.mxu2 %v488_v13 }
  0x3a   :  { %225 = vmatpush.msrb.mxu1 %v500_v15  ;;  %285 = vmatpush.msrb.mxu3 %v479_v12  ;;  %v335_v12 = vld [vmem:[%s672_s4] ss:$0 sm:$0xff] }
  0x3b   :  { %195 = vmatpush.msrb.mxu0 %v508_v16  ;;  %256 = vmatpush.msrb.mxu2 %v500_v15 }
  0x3c   :  { %226 = vmatpush.msrb.mxu1 %v508_v16  ;;  %286 = vmatpush.msrb.mxu3 %v488_v13 }
  0x3d   :  { %196 = vmatpush.msrb.mxu0 %v517_v17  ;;  %257 = vmatpush.msrb.mxu2 %v508_v16 }
  0x3e   :  { %227 = vmatpush.msrb.mxu1 %v517_v17  ;;  %287 = vmatpush.msrb.mxu3 %v500_v15  ;;  %v336_v15 = vld [vmem:[#allocation2] ss:$0 sm:$0xff] }
  0x3f   :  { %197 = vmatpush.msrb.mxu0 %v526_v18  ;;  %258 = vmatpush.msrb.mxu2 %v517_v17 }
  0x40   :  { %228 = vmatpush.msrb.mxu1 %v526_v18  ;;  %288 = vmatpush.msrb.mxu3 %v508_v16 }
  0x41   :  { %198 = vmatpush.msrb.mxu0 %v535_v19  ;;  %259 = vmatpush.msrb.mxu2 %v526_v18 }
  0x42   :  { %229 = vmatpush.msrb.mxu1 %v535_v19  ;;  %289 = vmatpush.msrb.mxu3 %v517_v17 }
  0x43   :  { %260 = vmatpush.msrb.mxu2 %v535_v19  ;;  %116 = vperm.xlu1 %331, %v322_v29  }
  0x44   :  { %290 = vmatpush.msrb.mxu3 %v526_v18  ;;  %178 = vperm.xlu2 %332, %v324_v44  }
  0x46   :  { %291 = vmatpush.msrb.mxu3 %v535_v19 }
  0x4b   :  { %147 = vperm.xlu1 %331, %v323_v30  }
  0x4c   :  { %209 = vperm.xlu2 %332, %v325_v45  }
  0x53   :  { %271 = vperm.xlu1 %331, %v327_v31  }
  0x78   :  { %v49_v22 = vpop.permute.xlu0 %48 }
  0x79   :  { %v54_v23 = vmul.f32 %v618_v21, %v49_v22 }
  0x7b   :  { %v58_v25 = vadd.f32 %v624_v24, %v54_v23 }
  0x80   :  { %v86_v32 = vpop.permute.xlu0 %85 }
  0x81   :  { %v88_v33 = vmul.f32 %v618_v21, %v86_v32 }
  0x83   :  { %v89_v34 = vadd.f32 %v624_v24, %v88_v33 }
  0x88   :  { %v241_v0 = vpop.permute.xlu0 %240 }
  0x89   :  { %v243_v1 = vmul.f32 %v618_v21, %v241_v0 }
  0x8b   :  { %v244_v2 = vadd.f32 %v624_v24, %v243_v1 }
  0x9e   :  { %v76_v26 = vpop.f32.mrf.mxu0  ;;  %v179_v52 = vpop.permute.xlu2 %178 }
  0x9f   :  { %v79_v27 = vadd.f32 %v76_v26, %v58_v25  ;;  %v181_v53 = vmul.f32 %v618_v21, %v179_v52 }
  0xa1   :  { %337 = vtanh.f32 %v79_v27  ;;  %v182_v54 = vadd.f32 %v624_v24, %v181_v53 }
  0xa6   :  { %v210_v58 = vpop.permute.xlu2 %209 }
  0xa7   :  { %v338_v28 = vpop.eup %337  ;;  %v212_v59 = vmul.f32 %v618_v21, %v210_v58 }
  0xa8   :  { %106 = vmatmul.f32.vlgmr.msra.gmra.mxu1 %v338_v28 }
  0xa9   :  { %v213_v60 = vadd.f32 %v624_v24, %v212_v59 }
  0xb5   :  { %v117_v38 = vpop.permute.xlu1 %116 }
  0xb6   :  { %v119_v39 = vmul.f32 %v618_v21, %v117_v38 }
  0xb8   :  { %v120_v40 = vadd.f32 %v624_v24, %v119_v39 }
  0xbd   :  { %v148_v46 = vpop.permute.xlu1 %147 }
  0xbe   :  { %v150_v47 = vmul.f32 %v618_v21, %v148_v46 }
  0xc0   :  { %v151_v48 = vadd.f32 %v624_v24, %v150_v47 }
  0xc5   :  { %v272_v7 = vpop.permute.xlu1 %271 }
  0xc6   :  { %v274_v8 = vmul.f32 %v618_v21, %v272_v7 }
  0xc8   :  { %v275_v9 = vadd.f32 %v624_v24, %v274_v8 }
 0x125   :  { %v107_v35 = vpop.f32.mrf.mxu1 }
 0x126   :  { %v110_v36 = vadd.f32 %v107_v35, %v89_v34 }
 0x128   :  { %339 = vtanh.f32 %v110_v36 }
 0x12e   :  { %v340_v37 = vpop.eup %339 }
 0x12f   :  { %137 = vmatmul.f32.vlgmr.msra.gmra.mxu2 %v340_v37 }
 0x1b2   :  { %v138_v41 = vpop.f32.mrf.mxu2 }
 0x1b3   :  { %v141_v42 = vadd.f32 %v138_v41, %v120_v40 }
 0x1b5   :  { %341 = vtanh.f32 %v141_v42 }
 0x1bb   :  { %v342_v43 = vpop.eup %341 }
 0x1bc   :  { %168 = vmatmul.f32.vlgmr.msra.gmra.mxu3 %v342_v43 }
 0x23f   :  { %v169_v49 = vpop.f32.mrf.mxu3 }
 0x240   :  { %v172_v50 = vadd.f32 %v169_v49, %v151_v48 }
 0x242   :  { %343 = vtanh.f32 %v172_v50 }
 0x248   :  { %v344_v51 = vpop.eup %343 }
 0x249   :  { %199 = vmatmul.f32.vlgmr.msrb.gmra.mxu0 %v344_v51 }
 0x2c6   :  { %v200_v55 = vpop.f32.mrf.mxu0 }
 0x2c7   :  { %v203_v56 = vadd.f32 %v200_v55, %v182_v54 }
 0x2c9   :  { %345 = vtanh.f32 %v203_v56 }
 0x2cf   :  { %v346_v57 = vpop.eup %345 }
 0x2d0   :  { %230 = vmatmul.f32.vlgmr.msrb.gmra.mxu1 %v346_v57 }
 0x34d   :  { %v231_v61 = vpop.f32.mrf.mxu1 }
 0x34e   :  { %v234_v62 = vadd.f32 %v231_v61, %v213_v60 }
 0x350   :  { %347 = vtanh.f32 %v234_v62 }
 0x356   :  { %v348_v63 = vpop.eup %347 }
 0x357   :  { %261 = vmatmul.f32.vlgmr.msrb.gmra.mxu2 %v348_v63 }
 0x3da   :  { %v262_v3 = vpop.f32.mrf.mxu2 }
 0x3db   :  { %v265_v4 = vadd.f32 %v262_v3, %v244_v2 }
 0x3dd   :  { %349 = vtanh.f32 %v265_v4 }
 0x3e3   :  { %v350_v5 = vpop.eup %349 }
 0x3e4   :  { %292 = vmatmul.f32.vlgmr.msrb.gmra.mxu3 %v350_v5 }
 0x467   :  { %v293_v10 = vpop.f32.mrf.mxu3 }
 0x468   :  { %v296_v11 = vadd.f32 %v293_v10, %v275_v9 }
 0x46a   :  { %351 = vtanh.f32 %v296_v11 }
 0x470   :  { %v352_v13 = vpop.eup %351 }
 0x471   :  { %298 = vst [vmem:[%s674_s7] sm:$0xff] %v352_v13  ;;  %v303_v14 = vmul.f32 %v352_v13, %v335_v12 }
 0x473   :  { %304 = vadd.xlane.f32.xlu2 %v303_v14 }
 0x4e6   :  { %v305_v16 = vpop.xlane.xlu2 %304 }
 0x4e7   :  { %v310_v17 = vadd.f32 %v336_v15, %v305_v16 }
 0x4e9   :  { %312 = vst.msk [vmem:[%s675_s6] sm:$0xff] %vm311_vm0, %v310_v17 }

</bundles_post_ra>
